<compile_context>
chip_gen: v7x
topology: tpu7x:2x2x1
jax: 0.10.0
libtpu: 0.0.40
codegen_flags: <defaults>
</compile_context>

<pallas_src>
import functools
import itertools

import numpy as np
import jax
import jax.numpy as jnp
from jax.experimental import pallas as pl
from jax.experimental.pallas import tpu as pltpu

try:  # exact O(n^3) LSA if available; tiny brute force fallback otherwise
    from scipy.optimize import linear_sum_assignment as _scipy_lsa
except Exception:  # pragma: no cover
    _scipy_lsa = None

_PAD_LOGIT = -30.0   # padded logit columns are masked to exact 0 in the focal kernel
_PAD_BOX = 0.5       # identical src/tgt pad boxes -> 0 L1 and 0 (1 - GIoU)


def _round_up(x, m):
    return ((x + m - 1) // m) * m


def _pow(x, g):
    # gamma is 2.0 in practice; avoid a general pow lowering when possible.
    if float(g) == 2.0:
        return x * x
    return x ** g


# --------------------------------------------------------------------------
# Kernel 1: block-diagonal pairwise matching costs for all L layers.
#   grid = (L, B, Q_pad // q_tile); per step: this batch's [q_tile, M_b_pad]
#   cost tile only (no cross-batch work).
# --------------------------------------------------------------------------
def _cost_matrix_kernel(logits_ref, bbox_ref, onehot_ref, tbox_ref, c_ref,
                        *, alpha, gamma, w_bbox, w_giou):
    x = logits_ref[...]                            # [tq, C_pad] f32
    # One exp + one log per element (was exp + 2 logs):
    #   e = exp(-|x|); sp = log(1 + e)
    #   -log(sigmoid(x))     = sp + relu(-x)
    #   -log(1 - sigmoid(x)) = sp + relu(x)
    e = jnp.exp(-jnp.abs(x))
    one_pe = 1.0 + e
    sp = jnp.log(one_pe)
    r = pl.reciprocal(one_pe, approx=True)         # EUP slot (matcher: ordering only)
    prob = jnp.where(x >= 0.0, r, e * r)           # sigmoid(x)
    neg = (1.0 - alpha) * _pow(prob, gamma) * (sp + jnp.maximum(x, 0.0))
    pos = alpha * _pow(1.0 - prob, gamma) * (sp + jnp.maximum(-x, 0.0))
    # column-gather at tgt_ids via one-hot matmul on the MXU (bf16 in, f32 acc);
    # w_class is already folded into the one-hot on the host.
    cost_class = jnp.dot((pos - neg).astype(jnp.bfloat16), onehot_ref[...],
                         preferred_element_type=jnp.float32)   # [tq, Mb_pad]

    pb = bbox_ref[...]                             # [tq, 4]  (cx, cy, w, h)
    tb = tbox_ref[...]                             # [4, Mb_pad] transposed targets
    pcx, pcy, pw, ph = pb[:, 0:1], pb[:, 1:2], pb[:, 2:3], pb[:, 3:4]   # [tq,1]
    tcx, tcy, tw, th = tb[0:1, :], tb[1:2, :], tb[2:3, :], tb[3:4, :]   # [1,Mb]

    cost_bbox = (jnp.abs(pcx - tcx) + jnp.abs(pcy - tcy)
                 + jnp.abs(pw - tw) + jnp.abs(ph - th))                 # [tq,Mb]

    # cxcywh -> xyxy
    px0, py0 = pcx - 0.5 * pw, pcy - 0.5 * ph
    px1, py1 = pcx + 0.5 * pw, pcy + 0.5 * ph
    tx0, ty0 = tcx - 0.5 * tw, tcy - 0.5 * th
    tx1, ty1 = tcx + 0.5 * tw, tcy + 0.5 * th

    area_p = (px1 - px0) * (py1 - py0)
    area_t = (tx1 - tx0) * (ty1 - ty0)
    inter = (jnp.maximum(jnp.minimum(px1, tx1) - jnp.maximum(px0, tx0), 0.0)
             * jnp.maximum(jnp.minimum(py1, ty1) - jnp.maximum(py0, ty0), 0.0))
    union = area_p + area_t - inter
    iou = inter * pl.reciprocal(union, approx=True)
    enc = (jnp.maximum(jnp.maximum(px1, tx1) - jnp.minimum(px0, tx0), 0.0)
           * jnp.maximum(jnp.maximum(py1, ty1) - jnp.minimum(py0, ty0), 0.0))
    giou = iou - (enc - union) * pl.reciprocal(enc, approx=True)

    c_ref[...] = w_bbox * cost_bbox + cost_class - w_giou * giou


def pallas_cost_matrices(logits_pad, bbox_pad, onehot_b, tbox_b,
                         *, alpha, gamma, w_bbox, w_giou, q_tile):
    L, B, Q_pad, C_pad = logits_pad.shape
    Mb_pad = tbox_b.shape[2]
    kern = functools.partial(_cost_matrix_kernel, alpha=alpha, gamma=gamma,
                             w_bbox=w_bbox, w_giou=w_giou)
    return pl.pallas_call(
        kern,
        out_shape=jax.ShapeDtypeStruct((L, B, Q_pad, Mb_pad), jnp.float32),
        grid=(L, B, Q_pad // q_tile),
        in_specs=[
            pl.BlockSpec((None, None, q_tile, C_pad), lambda l, b, i: (l, b, i, 0)),
            pl.BlockSpec((None, None, q_tile, 4), lambda l, b, i: (l, b, i, 0)),
            pl.BlockSpec((None, C_pad, Mb_pad), lambda l, b, i: (b, 0, 0)),
            pl.BlockSpec((None, 4, Mb_pad), lambda l, b, i: (b, 0, 0)),
        ],
        out_specs=pl.BlockSpec((None, None, q_tile, Mb_pad),
                               lambda l, b, i: (l, b, i, 0)),
        compiler_params=pltpu.CompilerParams(
            dimension_semantics=("parallel", "parallel", "parallel")),
    )(logits_pad, bbox_pad, onehot_b, tbox_b)


# --------------------------------------------------------------------------
# Kernel 2: sigmoid focal loss summed per (layer, batch)  (loss_ce numerator).
#   PyTorch: sigmoid_focal_loss(...).mean(1).sum()/num_boxes * Q
#          == sum(focal)/num_boxes  (the Q's cancel) -> kernel emits sums.
#   One-hot targets are built in-kernel from int32 class ids (iota + compare);
#   padded rows carry class -1 and are forced to exact 0.
# --------------------------------------------------------------------------
def _focal_sum_kernel(logits_ref, tclass_ref, out_ref,
                      *, alpha, gamma, num_real_cols):
    x = logits_ref[...]                            # [Q_pad, C_pad]
    tc = tclass_ref[...]                           # [Q_pad, 1] int32 (-1 = pad row)
    col = jax.lax.broadcasted_iota(jnp.int32, x.shape, 1)
    # class == num_classes (no-object) and padded classes map to all-zero rows,
    # matching the scatter + drop-last-column trick in the reference.
    t = jnp.where((col == tc) & (col < num_real_cols), 1.0, 0.0)

    e = jnp.exp(-jnp.abs(x))                       # single exp per element
    one_pe = 1.0 + e
    prob = jnp.where(x >= 0.0, 1.0, e) / one_pe                # exact sigmoid
    ce = jnp.maximum(x, 0.0) - x * t + jnp.log(one_pe)         # BCE with logits
    p_t = prob * t + (1.0 - prob) * (1.0 - t)
    loss = ce * _pow(1.0 - p_t, gamma)
    if alpha >= 0:
        loss = (alpha * t + (1.0 - alpha) * (1.0 - t)) * loss
    # exact zero for padded rows / padded class columns
    loss = jnp.where((tc >= 0) & (col < num_real_cols), loss, 0.0)
    out_ref[...] = jnp.sum(loss, keepdims=True)


def pallas_focal_sums(logits_pad, tclass_pad, *, alpha, gamma, num_real_cols):
    L, B, Q_pad, C_pad = logits_pad.shape
    kern = functools.partial(_focal_sum_kernel, alpha=alpha, gamma=gamma,
                             num_real_cols=num_real_cols)
    out = pl.pallas_call(
        kern,
        out_shape=jax.ShapeDtypeStruct((L, B, 1, 1), jnp.float32),
        grid=(L, B),
        in_specs=[
            pl.BlockSpec((None, None, Q_pad, C_pad), lambda l, b: (l, b, 0, 0)),
            pl.BlockSpec((None, None, Q_pad, 1), lambda l, b: (l, b, 0, 0)),
        ],
        out_specs=pl.BlockSpec((None, None, 1, 1), lambda l, b: (l, b, 0, 0)),
        compiler_params=pltpu.CompilerParams(
            dimension_semantics=("parallel", "parallel")),
    )(logits_pad, tclass_pad)
    return jnp.sum(out, axis=(1, 2, 3))            # [L] per-layer focal sums


# --------------------------------------------------------------------------
# Kernel 3: matched-pair box losses per layer (sum L1, sum 1 - diag GIoU).
#   Src and tgt boxes are packed into one [L, 8, K_pad] tensor (sublanes 0-3 =
#   src cxcywh, 4-7 = tgt cxcywh) so each step fills whole 8x128 vregs with a
#   single DMA stream.
# --------------------------------------------------------------------------
def _box_loss_kernel(boxes_ref, l1_ref, giou_ref):
    bx = boxes_ref[...]                            # [8, K_pad]
    l1_ref[...] = jnp.sum(jnp.abs(bx[0:4, :] - bx[4:8, :]), keepdims=True)

    scx, scy, sw, sh = bx[0:1, :], bx[1:2, :], bx[2:3, :], bx[3:4, :]
    tcx, tcy, tw, th = bx[4:5, :], bx[5:6, :], bx[6:7, :], bx[7:8, :]
    sx0, sy0 = scx - 0.5 * sw, scy - 0.5 * sh
    sx1, sy1 = scx + 0.5 * sw, scy + 0.5 * sh
    tx0, ty0 = tcx - 0.5 * tw, tcy - 0.5 * th
    tx1, ty1 = tcx + 0.5 * tw, tcy + 0.5 * th

    area_s = (sx1 - sx0) * (sy1 - sy0)
    area_t = (tx1 - tx0) * (ty1 - ty0)
    inter = (jnp.maximum(jnp.minimum(sx1, tx1) - jnp.maximum(sx0, tx0), 0.0)
             * jnp.maximum(jnp.minimum(sy1, ty1) - jnp.maximum(sy0, ty0), 0.0))
    union = area_s + area_t - inter
    iou = inter / union                            # exact (loss value fidelity)
    enc = (jnp.maximum(jnp.maximum(sx1, tx1) - jnp.minimum(sx0, tx0), 0.0)
           * jnp.maximum(jnp.maximum(sy1, ty1) - jnp.minimum(sy0, ty0), 0.0))
    # NOTE: no epsilon, matching torchvision.generalized_box_iou (latent NaN for
    # degenerate predicted boxes, same as the reference).
    giou = iou - (enc - union) / enc               # diagonal of pairwise GIoU
    giou_ref[...] = jnp.sum(1.0 - giou, keepdims=True)


def pallas_box_loss_sums(packed_boxes):
    L, _, K_pad = packed_boxes.shape
    return pl.pallas_call(
        _box_loss_kernel,
        out_shape=(jax.ShapeDtypeStruct((L, 1, 1), jnp.float32),
                   jax.ShapeDtypeStruct((L, 1, 1), jnp.float32)),
        grid=(L,),
        in_specs=[pl.BlockSpec((None, 8, K_pad), lambda l: (l, 0, 0))],
        out_specs=(pl.BlockSpec((None, 1, 1), lambda l: (l, 0, 0)),
                   pl.BlockSpec((None, 1, 1), lambda l: (l, 0, 0))),
        compiler_params=pltpu.CompilerParams(dimension_semantics=("parallel",)),
    )(packed_boxes)


# --------------------------------------------------------------------------
# Host-side exact linear-sum-assignment.
# TODO(synk): the Hungarian assignment is sequential/combinatorial — no clean
# Pallas equivalent; solved on host (scipy if present, brute force fallback
# which is only feasible for toy Q).
# --------------------------------------------------------------------------
def _linear_sum_assignment(cost):
    if _scipy_lsa is not None:
        r, c = _scipy_lsa(cost)
        return np.asarray(r, np.int64), np.asarray(c, np.int64)
    nq, nt = cost.shape
    cols = np.arange(nt)
    best_rows, best_cost = None, np.inf
    for perm in itertools.permutations(range(nq), nt):
        ccost = cost[list(perm), cols].sum()
        if ccost < best_cost:
            best_cost, best_rows = ccost, np.asarray(perm, np.int64)
    order = np.argsort(best_rows)
    return best_rows[order], cols[order].astype(np.int64)


# --------------------------------------------------------------------------
# SetBasedLoss (forward only)
# --------------------------------------------------------------------------
class SetBasedLossPallas:
    def __init__(self, num_classes, cost_class=2.0, cost_bbox=2.0, cost_giou=5.0,
                 focal_alpha=0.25, focal_gamma=2.0, losses=('labels', 'boxes')):
        self.num_classes = num_classes
        self.cost_class = cost_class
        self.cost_bbox = cost_bbox
        self.cost_giou = cost_giou
        self.focal_alpha = focal_alpha
        self.focal_gamma = focal_gamma
        # Reference HungarianMatcher keeps its own default alpha/gamma.
        self.matcher_alpha = 0.25
        self.matcher_gamma = 2.0
        self.losses = list(losses)

    # ---- HungarianMatcher for ALL layers: one kernel, one host sync ----
    def _match_all_layers(self, logits_pad, bbox_pad, labels_host, boxes_host,
                          sizes, L, B, Q, C_pad, q_tile):
        if int(sum(sizes)) == 0:
            empty = (np.zeros(0, np.int64), np.zeros(0, np.int64))
            return [[empty for _ in range(B)] for _ in range(L)]

        Mmax = int(max(sizes))
        Mb_pad = _round_up(max(Mmax, 1), 128)

        # per-batch one-hot gather matrix (w_class folded in) and target boxes
        onehot = np.zeros((B, C_pad, Mb_pad), np.float32)
        tbox = np.full((B, 4, Mb_pad), _PAD_BOX, np.float32)
        for b in range(B):
            s = sizes[b]
            if s:
                onehot[b, labels_host[b], np.arange(s)] = self.cost_class
                tbox[b, :, :s] = boxes_host[b].T

        cost = pallas_cost_matrices(
            logits_pad, bbox_pad,
            jnp.asarray(onehot, dtype=jnp.bfloat16), jnp.asarray(tbox),
            alpha=self.matcher_alpha, gamma=self.matcher_gamma,
            w_bbox=self.cost_bbox, w_giou=self.cost_giou, q_tile=q_tile)

        # slice off Q/M padding on device, then a single device->host round trip
        cost_host = np.asarray(jax.device_get(cost[:, :, :Q, :Mmax]))

        indices = []
        for l in range(L):
            layer = []
            for b in range(B):
                s = sizes[b]
                if s == 0:
                    layer.append((np.zeros(0, np.int64), np.zeros(0, np.int64)))
                else:
                    layer.append(_linear_sum_assignment(cost_host[l, b, :, :s]))
            indices.append(layer)
        return indices

    def _class_error(self, last_logits, last_indices, labels_host, sizes):
        K = int(sum(sizes))
        if K == 0:
            return jnp.asarray(100.0, jnp.float32)
        batch_idx = np.concatenate(
            [np.full(s, b, np.int64) for b, s in enumerate(sizes)])
        src_idx = np.concatenate(
            [np.asarray(src, np.int64) for src, _ in last_indices])
        tco = np.concatenate(
            [labels_host[b][np.asarray(tgt, np.int64)]
             for b, (_, tgt) in enumerate(last_indices)])
        sel = last_logits[jnp.asarray(batch_idx), jnp.asarray(src_idx)]   # [K, C]
        pred = jnp.argmax(sel, axis=-1)
        acc = 100.0 * jnp.mean((pred == jnp.asarray(tco)).astype(jnp.float32))
        return 100.0 - acc

    def __call__(self, outputs, targets):
        outputs_class, outputs_coord = outputs        # [L,B,Q,C], [L,B,Q,4]
        L, B, Q, C = outputs_class.shape
        assert C == self.num_classes, (
            "SetBasedLoss expects the logits' class dim to equal num_classes "
            f"(got C={C}, num_classes={self.num_classes})")

        # tiny target tensors: one host fetch up front
        labels_host = [np.asarray(jax.device_get(t['labels'])).astype(np.int64)
                       for t in targets]
        boxes_host = [np.asarray(jax.device_get(t['boxes'])).astype(np.float32)
                      for t in targets]
        sizes = [int(l.shape[0]) for l in labels_host]
        M = int(sum(sizes))
        num_boxes = max(float(M), 1.0)                # world_size == 1

        # padded, lane-dense device tensors shared by matcher + focal kernels
        C_pad = _round_up(C, 128)
        q_tile = min(512, _round_up(Q, 8))            # bigger tiles; VMEM is not binding
        Q_pad = _round_up(Q, q_tile)

        logits_pad = jnp.pad(outputs_class.astype(jnp.float32),
                             ((0, 0), (0, 0), (0, Q_pad - Q), (0, C_pad - C)),
                             constant_values=_PAD_LOGIT)
        bbox_pad = jnp.pad(outputs_coord.astype(jnp.float32),
                           ((0, 0), (0, 0), (0, Q_pad - Q), (0, 0)),
                           constant_values=_PAD_BOX)

        # 1) Hungarian matching for all layers (one block-diagonal kernel + one sync)
        indices = self._match_all_layers(logits_pad, bbox_pad, labels_host,
                                         boxes_host, sizes, L, B, Q, C_pad, q_tile)

        losses = {}
        focal_sums = l1_sums = giou_sums = None

        # 2) focal classification loss for all layers (grid over (L, B))
        if 'labels' in self.losses:
            tclass = np.full((L, B, Q_pad, 1), -1, np.int32)   # -1 = padded row
            tclass[:, :, :Q, 0] = self.num_classes
            for l in range(L):
                for b, (src, tgt) in enumerate(indices[l]):
                    if len(src):
                        tclass[l, b, np.asarray(src, np.int64), 0] = \
                            labels_host[b][np.asarray(tgt, np.int64)]
            focal_sums = pallas_focal_sums(
                logits_pad, jnp.asarray(tclass),
                alpha=self.focal_alpha, gamma=self.focal_gamma, num_real_cols=C)

        # 3) matched-pair box losses for all layers (one gridded kernel)
        if 'boxes' in self.losses and M > 0:
            batch_idx = np.concatenate(
                [np.full(s, b, np.int64) for b, s in enumerate(sizes)])
            src_idx_all = np.stack(
                [np.concatenate([np.asarray(indices[l][b][0], np.int64)
                                 for b in range(B)]) for l in range(L)])   # [L,K]
            tgt_box_all = np.stack(
                [np.concatenate([boxes_host[b][np.asarray(indices[l][b][1], np.int64)]
                                 for b in range(B)], axis=0)
                 for l in range(L)]).astype(np.float32)                    # [L,K,4]

            K = M
            K_pad = _round_up(K, 128)
            l_idx = jnp.arange(L)[:, None]
            src_boxes = outputs_coord.astype(jnp.float32)[
                l_idx, jnp.asarray(batch_idx)[None, :], jnp.asarray(src_idx_all)]
            pad = jnp.full((L, K_pad - K, 4), _PAD_BOX, jnp.float32)
            src_t = jnp.transpose(jnp.concatenate([src_boxes, pad], axis=1),
                                  (0, 2, 1))                               # [L,4,Kp]
            tgt_t = jnp.transpose(
                jnp.concatenate([jnp.asarray(tgt_box_all), pad], axis=1), (0, 2, 1))
            packed = jnp.concatenate([src_t, tgt_t], axis=1)               # [L,8,Kp]
            l1_sums, giou_sums = pallas_box_loss_sums(packed)

        # assemble per-layer loss dict (final layer = no suffix, logs class_error)
        for l in range(L):
            suffix = '' if l == L - 1 else f'_{l}'
            if 'labels' in self.losses:
                losses['loss_ce' + suffix] = (
                    self.cost_class * focal_sums[l] / num_boxes)
                if l == L - 1:
                    losses['class_error'] = self._class_error(
                        outputs_class[-1], indices[-1], labels_host, sizes)
            if 'boxes' in self.losses:
                if M > 0:
                    losses['loss_bbox' + suffix] = (
                        l1_sums[l, 0, 0] / num_boxes * self.cost_bbox)
                    losses['loss_giou' + suffix] = (
                        giou_sums[l, 0, 0] / num_boxes * self.cost_giou)
                else:
                    losses['loss_bbox' + suffix] = jnp.zeros((), jnp.float32)
                    losses['loss_giou' + suffix] = jnp.zeros((), jnp.float32)
        return losses


if __name__ == "__main__":
    key = jax.random.PRNGKey(0)
    L, B, Q, C = 2, 2, 8, 6       # decoder layers, batch, queries, classes

    k1, k2, k3 = jax.random.split(key, 3)
    outputs_class = jax.random.normal(k1, (L, B, Q, C), dtype=jnp.float32)
    outputs_coord = jax.nn.sigmoid(
        jax.random.normal(k2, (L, B, Q, 4), dtype=jnp.float32))

    n_tgt = [3, 2]
    targets = []
    tkeys = jax.random.split(k3, B)
    for b in range(B):
        ka, kb, kc = jax.random.split(tkeys[b], 3)
        n = n_tgt[b]
        labels = jax.random.randint(ka, (n,), 0, C)
        cxy = jax.random.uniform(kb, (n, 2), minval=0.2, maxval=0.8)
        wh = jax.random.uniform(kc, (n, 2), minval=0.05, maxval=0.4)
        targets.append({'labels': labels,
                        'boxes': jnp.concatenate([cxy, wh], axis=-1)})

    criterion = SetBasedLossPallas(num_classes=C)
    losses = criterion((outputs_class, outputs_coord), targets)

    for v in jax.tree_util.tree_leaves(losses):
        if isinstance(v, jax.Array):
            jax.block_until_ready(v)

    print("KERNEL_OK")
</pallas_src>

<mosaic_0001>
module attributes {stable_mosaic.version = 11 : i64} {
  func.func @_cost_matrix_kernel(%arg0: i32, %arg1: i32, %arg2: i32, %arg3: memref<1x1x8x128xf32, #tpu.memory_space<vmem>>, %arg4: memref<1x1x8x4xf32, #tpu.memory_space<vmem>>, %arg5: memref<1x128x128xbf16, #tpu.memory_space<vmem>>, %arg6: memref<1x4x128xf32, #tpu.memory_space<vmem>>, %arg7: memref<1x1x8x128xf32, #tpu.memory_space<vmem>>) attributes {dimension_semantics = [#tpu.dimension_semantics<parallel>, #tpu.dimension_semantics<parallel>, #tpu.dimension_semantics<parallel>], iteration_bounds = array<i64: 2, 2, 1>, scalar_prefetch = 0 : i64, scratch_operands = 0 : i64, tpu.core_type = #tpu.core_type<tc>, window_params = [{transform_indices = @transform_0, window_bounds = array<i64: 1, 1, 8, 128>}, {transform_indices = @transform_1, window_bounds = array<i64: 1, 1, 8, 4>}, {transform_indices = @transform_2, window_bounds = array<i64: 1, 128, 128>}, {transform_indices = @transform_3, window_bounds = array<i64: 1, 4, 128>}, {transform_indices = @transform_4, window_bounds = array<i64: 1, 1, 8, 128>}]} {
    %c0 = arith.constant 0 : index
    %c0_0 = arith.constant 0 : index
    %c0_1 = arith.constant 0 : index
    %c0_2 = arith.constant 0 : index
    %0 = vector.load %arg3[%c0, %c0_0, %c0_1, %c0_2] : memref<1x1x8x128xf32, #tpu.memory_space<vmem>>, vector<1x1x8x128xf32>
    %1 = vector.shape_cast %0 : vector<1x1x8x128xf32> to vector<8x128xf32>
    %2 = math.absf %1 : vector<8x128xf32>
    %cst = arith.constant 0.000000e+00 : f32
    %3 = vector.broadcast %cst : f32 to vector<8x128xf32>
    %4 = arith.subf %3, %2 : vector<8x128xf32>
    %5 = math.exp %4 : vector<8x128xf32>
    %cst_3 = arith.constant 1.000000e+00 : f32
    %6 = vector.broadcast %cst_3 : f32 to vector<8x128xf32>
    %7 = arith.addf %6, %5 : vector<8x128xf32>
    %8 = math.log %7 : vector<8x128xf32>
    %9 = tpu.reciprocal %7 {approx = true} : vector<8x128xf32> -> vector<8x128xf32>
    %cst_4 = arith.constant 0.000000e+00 : f32
    %10 = vector.broadcast %cst_4 : f32 to vector<8x128xf32>
    %11 = arith.cmpf oge, %1, %10 : vector<8x128xf32>
    %12 = arith.mulf %5, %9 : vector<8x128xf32>
    %13 = arith.select %11, %9, %12 : vector<8x128xi1>, vector<8x128xf32>
    %14 = arith.mulf %13, %13 : vector<8x128xf32>
    %cst_5 = arith.constant 7.500000e-01 : f32
    %15 = vector.broadcast %cst_5 : f32 to vector<8x128xf32>
    %16 = arith.mulf %15, %14 : vector<8x128xf32>
    %cst_6 = arith.constant 0.000000e+00 : f32
    %17 = vector.broadcast %cst_6 : f32 to vector<8x128xf32>
    %18 = arith.maximumf %1, %17 : vector<8x128xf32>
    %19 = arith.addf %8, %18 : vector<8x128xf32>
    %20 = arith.mulf %16, %19 : vector<8x128xf32>
    %cst_7 = arith.constant 1.000000e+00 : f32
    %21 = vector.broadcast %cst_7 : f32 to vector<8x128xf32>
    %22 = arith.subf %21, %13 : vector<8x128xf32>
    %23 = arith.mulf %22, %22 : vector<8x128xf32>
    %cst_8 = arith.constant 2.500000e-01 : f32
    %24 = vector.broadcast %cst_8 : f32 to vector<8x128xf32>
    %25 = arith.mulf %24, %23 : vector<8x128xf32>
    %cst_9 = arith.constant 0.000000e+00 : f32
    %26 = vector.broadcast %cst_9 : f32 to vector<8x128xf32>
    %27 = arith.subf %26, %1 : vector<8x128xf32>
    %cst_10 = arith.constant 0.000000e+00 : f32
    %28 = vector.broadcast %cst_10 : f32 to vector<8x128xf32>
    %29 = arith.maximumf %27, %28 : vector<8x128xf32>
    %30 = arith.addf %8, %29 : vector<8x128xf32>
    %31 = arith.mulf %25, %30 : vector<8x128xf32>
    %32 = arith.subf %31, %20 : vector<8x128xf32>
    %33 = arith.truncf %32 : vector<8x128xf32> to vector<8x128xbf16>
    %c0_11 = arith.constant 0 : index
    %c0_12 = arith.constant 0 : index
    %c0_13 = arith.constant 0 : index
    %34 = vector.load %arg5[%c0_11, %c0_12, %c0_13] : memref<1x128x128xbf16, #tpu.memory_space<vmem>>, vector<1x128x128xbf16>
    %35 = vector.shape_cast %34 : vector<1x128x128xbf16> to vector<128x128xbf16>
    %cst_14 = arith.constant dense<0.000000e+00> : vector<8x128xf32>
    %36 = tpu.matmul %33, %35, %cst_14 {dimension_numbers = #tpu.dot_dimension_numbers<[1], [0], [0], [1], [0, 0, 1, 1], [], []>} : vector<8x128xbf16>, vector<128x128xbf16>, vector<8x128xf32> -> vector<8x128xf32>
    %c0_15 = arith.constant 0 : index
    %c0_16 = arith.constant 0 : index
    %c0_17 = arith.constant 0 : index
    %c0_18 = arith.constant 0 : index
    %37 = vector.load %arg4[%c0_15, %c0_16, %c0_17, %c0_18] : memref<1x1x8x4xf32, #tpu.memory_space<vmem>>, vector<1x1x8x4xf32>
    %38 = vector.shape_cast %37 : vector<1x1x8x4xf32> to vector<8x4xf32>
    %c0_19 = arith.constant 0 : index
    %c0_20 = arith.constant 0 : index
    %c0_21 = arith.constant 0 : index
    %39 = vector.load %arg6[%c0_19, %c0_20, %c0_21] : memref<1x4x128xf32, #tpu.memory_space<vmem>>, vector<1x4x128xf32>
    %40 = vector.shape_cast %39 : vector<1x4x128xf32> to vector<4x128xf32>
    %41 = vector.extract_strided_slice %38 {offsets = [0, 0], sizes = [8, 1], strides = [1, 1]} : vector<8x4xf32> to vector<8x1xf32>
    %42 = vector.extract_strided_slice %38 {offsets = [0, 1], sizes = [8, 1], strides = [1, 1]} : vector<8x4xf32> to vector<8x1xf32>
    %43 = vector.extract_strided_slice %38 {offsets = [0, 2], sizes = [8, 1], strides = [1, 1]} : vector<8x4xf32> to vector<8x1xf32>
    %44 = vector.extract_strided_slice %38 {offsets = [0, 3], sizes = [8, 1], strides = [1, 1]} : vector<8x4xf32> to vector<8x1xf32>
    %45 = vector.extract_strided_slice %40 {offsets = [0, 0], sizes = [1, 128], strides = [1, 1]} : vector<4x128xf32> to vector<1x128xf32>
    %46 = vector.extract_strided_slice %40 {offsets = [1, 0], sizes = [1, 128], strides = [1, 1]} : vector<4x128xf32> to vector<1x128xf32>
    %47 = vector.extract_strided_slice %40 {offsets = [2, 0], sizes = [1, 128], strides = [1, 1]} : vector<4x128xf32> to vector<1x128xf32>
    %48 = vector.extract_strided_slice %40 {offsets = [3, 0], sizes = [1, 128], strides = [1, 1]} : vector<4x128xf32> to vector<1x128xf32>
    %49 = vector.broadcast %41 : vector<8x1xf32> to vector<8x128xf32>
    %50 = vector.broadcast %45 : vector<1x128xf32> to vector<8x128xf32>
    %51 = arith.subf %49, %50 : vector<8x128xf32>
    %52 = math.absf %51 : vector<8x128xf32>
    %53 = vector.broadcast %42 : vector<8x1xf32> to vector<8x128xf32>
    %54 = vector.broadcast %46 : vector<1x128xf32> to vector<8x128xf32>
    %55 = arith.subf %53, %54 : vector<8x128xf32>
    %56 = math.absf %55 : vector<8x128xf32>
    %57 = arith.addf %52, %56 : vector<8x128xf32>
    %58 = vector.broadcast %43 : vector<8x1xf32> to vector<8x128xf32>
    %59 = vector.broadcast %47 : vector<1x128xf32> to vector<8x128xf32>
    %60 = arith.subf %58, %59 : vector<8x128xf32>
    %61 = math.absf %60 : vector<8x128xf32>
    %62 = arith.addf %57, %61 : vector<8x128xf32>
    %63 = vector.broadcast %44 : vector<8x1xf32> to vector<8x128xf32>
    %64 = vector.broadcast %48 : vector<1x128xf32> to vector<8x128xf32>
    %65 = arith.subf %63, %64 : vector<8x128xf32>
    %66 = math.absf %65 : vector<8x128xf32>
    %67 = arith.addf %62, %66 : vector<8x128xf32>
    %cst_22 = arith.constant 5.000000e-01 : f32
    %68 = vector.broadcast %cst_22 : f32 to vector<8x1xf32>
    %69 = arith.mulf %68, %43 : vector<8x1xf32>
    %70 = arith.subf %41, %69 : vector<8x1xf32>
    %cst_23 = arith.constant 5.000000e-01 : f32
    %71 = vector.broadcast %cst_23 : f32 to vector<8x1xf32>
    %72 = arith.mulf %71, %44 : vector<8x1xf32>
    %73 = arith.subf %42, %72 : vector<8x1xf32>
    %cst_24 = arith.constant 5.000000e-01 : f32
    %74 = vector.broadcast %cst_24 : f32 to vector<8x1xf32>
    %75 = arith.mulf %74, %43 : vector<8x1xf32>
    %76 = arith.addf %41, %75 : vector<8x1xf32>
    %cst_25 = arith.constant 5.000000e-01 : f32
    %77 = vector.broadcast %cst_25 : f32 to vector<8x1xf32>
    %78 = arith.mulf %77, %44 : vector<8x1xf32>
    %79 = arith.addf %42, %78 : vector<8x1xf32>
    %cst_26 = arith.constant 5.000000e-01 : f32
    %80 = vector.broadcast %cst_26 : f32 to vector<1x128xf32>
    %81 = arith.mulf %80, %47 : vector<1x128xf32>
    %82 = arith.subf %45, %81 : vector<1x128xf32>
    %cst_27 = arith.constant 5.000000e-01 : f32
    %83 = vector.broadcast %cst_27 : f32 to vector<1x128xf32>
    %84 = arith.mulf %83, %48 : vector<1x128xf32>
    %85 = arith.subf %46, %84 : vector<1x128xf32>
    %cst_28 = arith.constant 5.000000e-01 : f32
    %86 = vector.broadcast %cst_28 : f32 to vector<1x128xf32>
    %87 = arith.mulf %86, %47 : vector<1x128xf32>
    %88 = arith.addf %45, %87 : vector<1x128xf32>
    %cst_29 = arith.constant 5.000000e-01 : f32
    %89 = vector.broadcast %cst_29 : f32 to vector<1x128xf32>
    %90 = arith.mulf %89, %48 : vector<1x128xf32>
    %91 = arith.addf %46, %90 : vector<1x128xf32>
    %92 = arith.subf %76, %70 : vector<8x1xf32>
    %93 = arith.subf %79, %73 : vector<8x1xf32>
    %94 = arith.mulf %92, %93 : vector<8x1xf32>
    %95 = arith.subf %88, %82 : vector<1x128xf32>
    %96 = arith.subf %91, %85 : vector<1x128xf32>
    %97 = arith.mulf %95, %96 : vector<1x128xf32>
    %98 = vector.broadcast %76 : vector<8x1xf32> to vector<8x128xf32>
    %99 = vector.broadcast %88 : vector<1x128xf32> to vector<8x128xf32>
    %100 = arith.minimumf %98, %99 : vector<8x128xf32>
    %101 = vector.broadcast %70 : vector<8x1xf32> to vector<8x128xf32>
    %102 = vector.broadcast %82 : vector<1x128xf32> to vector<8x128xf32>
    %103 = arith.maximumf %101, %102 : vector<8x128xf32>
    %104 = arith.subf %100, %103 : vector<8x128xf32>
    %cst_30 = arith.constant 0.000000e+00 : f32
    %105 = vector.broadcast %cst_30 : f32 to vector<8x128xf32>
    %106 = arith.maximumf %104, %105 : vector<8x128xf32>
    %107 = vector.broadcast %79 : vector<8x1xf32> to vector<8x128xf32>
    %108 = vector.broadcast %91 : vector<1x128xf32> to vector<8x128xf32>
    %109 = arith.minimumf %107, %108 : vector<8x128xf32>
    %110 = vector.broadcast %73 : vector<8x1xf32> to vector<8x128xf32>
    %111 = vector.broadcast %85 : vector<1x128xf32> to vector<8x128xf32>
    %112 = arith.maximumf %110, %111 : vector<8x128xf32>
    %113 = arith.subf %109, %112 : vector<8x128xf32>
    %cst_31 = arith.constant 0.000000e+00 : f32
    %114 = vector.broadcast %cst_31 : f32 to vector<8x128xf32>
    %115 = arith.maximumf %113, %114 : vector<8x128xf32>
    %116 = arith.mulf %106, %115 : vector<8x128xf32>
    %117 = vector.broadcast %94 : vector<8x1xf32> to vector<8x128xf32>
    %118 = vector.broadcast %97 : vector<1x128xf32> to vector<8x128xf32>
    %119 = arith.addf %117, %118 : vector<8x128xf32>
    %120 = arith.subf %119, %116 : vector<8x128xf32>
    %121 = tpu.reciprocal %120 {approx = true} : vector<8x128xf32> -> vector<8x128xf32>
    %122 = arith.mulf %116, %121 : vector<8x128xf32>
    %123 = vector.broadcast %76 : vector<8x1xf32> to vector<8x128xf32>
    %124 = vector.broadcast %88 : vector<1x128xf32> to vector<8x128xf32>
    %125 = arith.maximumf %123, %124 : vector<8x128xf32>
    %126 = vector.broadcast %70 : vector<8x1xf32> to vector<8x128xf32>
    %127 = vector.broadcast %82 : vector<1x128xf32> to vector<8x128xf32>
    %128 = arith.minimumf %126, %127 : vector<8x128xf32>
    %129 = arith.subf %125, %128 : vector<8x128xf32>
    %cst_32 = arith.constant 0.000000e+00 : f32
    %130 = vector.broadcast %cst_32 : f32 to vector<8x128xf32>
    %131 = arith.maximumf %129, %130 : vector<8x128xf32>
    %132 = vector.broadcast %79 : vector<8x1xf32> to vector<8x128xf32>
    %133 = vector.broadcast %91 : vector<1x128xf32> to vector<8x128xf32>
    %134 = arith.maximumf %132, %133 : vector<8x128xf32>
    %135 = vector.broadcast %73 : vector<8x1xf32> to vector<8x128xf32>
    %136 = vector.broadcast %85 : vector<1x128xf32> to vector<8x128xf32>
    %137 = arith.minimumf %135, %136 : vector<8x128xf32>
    %138 = arith.subf %134, %137 : vector<8x128xf32>
    %cst_33 = arith.constant 0.000000e+00 : f32
    %139 = vector.broadcast %cst_33 : f32 to vector<8x128xf32>
    %140 = arith.maximumf %138, %139 : vector<8x128xf32>
    %141 = arith.mulf %131, %140 : vector<8x128xf32>
    %142 = arith.subf %141, %120 : vector<8x128xf32>
    %143 = tpu.reciprocal %141 {approx = true} : vector<8x128xf32> -> vector<8x128xf32>
    %144 = arith.mulf %142, %143 : vector<8x128xf32>
    %145 = arith.subf %122, %144 : vector<8x128xf32>
    %cst_34 = arith.constant 2.000000e+00 : f32
    %146 = vector.broadcast %cst_34 : f32 to vector<8x128xf32>
    %147 = arith.mulf %146, %67 : vector<8x128xf32>
    %148 = arith.addf %147, %36 : vector<8x128xf32>
    %cst_35 = arith.constant 5.000000e+00 : f32
    %149 = vector.broadcast %cst_35 : f32 to vector<8x128xf32>
    %150 = arith.mulf %149, %145 : vector<8x128xf32>
    %151 = arith.subf %148, %150 : vector<8x128xf32>
    %c0_36 = arith.constant 0 : index
    %c0_37 = arith.constant 0 : index
    %c0_38 = arith.constant 0 : index
    %c0_39 = arith.constant 0 : index
    %152 = vector.load %arg7[%c0_36, %c0_37, %c0_38, %c0_39] : memref<1x1x8x128xf32, #tpu.memory_space<vmem>>, vector<1x1x8x128xf32>
    %153 = vector.shape_cast %152 : vector<1x1x8x128xf32> to vector<8x128xf32>
    %154 = vector.shape_cast %151 : vector<8x128xf32> to vector<1x1x8x128xf32>
    tpu.vector_store %arg7[%c0_36, %c0_37, %c0_38, %c0_39], %154 {strides = array<i32>} : memref<1x1x8x128xf32, #tpu.memory_space<vmem>>, vector<1x1x8x128xf32>,
    return
  }
  func.func @transform_0(%arg0: i32, %arg1: i32, %arg2: i32) -> (i32, i32, i32, i32) {
    %c0_i32 = arith.constant 0 : i32
    %c0_i32_0 = arith.constant 0 : i32
    return %arg0, %arg1, %arg2, %c0_i32 : i32, i32, i32, i32
  }
  func.func @transform_1(%arg0: i32, %arg1: i32, %arg2: i32) -> (i32, i32, i32, i32) {
    %c0_i32 = arith.constant 0 : i32
    %c0_i32_0 = arith.constant 0 : i32
    return %arg0, %arg1, %arg2, %c0_i32 : i32, i32, i32, i32
  }
  func.func @transform_2(%arg0: i32, %arg1: i32, %arg2: i32) -> (i32, i32, i32) {
    %c0_i32 = arith.constant 0 : i32
    %c0_i32_0 = arith.constant 0 : i32
    %c0_i32_1 = arith.constant 0 : i32
    return %arg1, %c0_i32, %c0_i32_0 : i32, i32, i32
  }
  func.func @transform_3(%arg0: i32, %arg1: i32, %arg2: i32) -> (i32, i32, i32) {
    %c0_i32 = arith.constant 0 : i32
    %c0_i32_0 = arith.constant 0 : i32
    %c0_i32_1 = arith.constant 0 : i32
    return %arg1, %c0_i32, %c0_i32_0 : i32, i32, i32
  }
  func.func @transform_4(%arg0: i32, %arg1: i32, %arg2: i32) -> (i32, i32, i32, i32) {
    %c0_i32 = arith.constant 0 : i32
    %c0_i32_0 = arith.constant 0 : i32
    return %arg0, %arg1, %arg2, %c0_i32 : i32, i32, i32, i32
  }
}

</mosaic_0001>

<bundles_post_ra>
// kernel: tpu_custom_call.1
= control target key start
LH: loop header
LB: loop body
LE: loop exit
PB: predicated region body
PF: predicated region fallthrough
CT: control target
= control target key end

     0   :  { %9 = vsyncpa [#allocation3], 0  ;;  %s1426_s0 = inlined_call_operand.vmem [shape: f32[2,2,8,128], index: 0, kind: input, shape index: {}]   ;;  %s1427_s1 = inlined_call_operand.vmem [shape: f32[2,2,8,4], index: 1, kind: input, shape index: {}]   ;;  %s1428_s2 = inlined_call_operand.hbm [shape: bf16[2,128,128], index: 2, kind: input, shape index: {}]   ;;  %s1429_s3 = inlined_call_operand.vmem [shape: f32[2,4,128], index: 3, kind: input, shape index: {}]   ;;  %s1430_s4 = inlined_call_operand.hbm [shape: f32[2,2,8,128], index: 4, kind: output, shape index: {}]  }
   0x1   :  { %11 = vsyncpa [#allocation3 + $0x1], 0 }
   0x2   :  { %12 = vsyncpa [#allocation4], 0 }
   0x3   :  { %14 = vsyncpa [#allocation4 + $0x1], 0  ;;  %s1161_s15 = smov 0   ;;  %s1163_s16 = smov 0  }
   0x4   :  { %s1165_s17 = smov 0   ;;  %s1167_s18 = smov 0  }
   0x5   :  { %s1169_s19 = smov 0   ;;  %s1171_s20 = smov 0  }
   0x6   :  { %s1173_s21 = smov 0   ;;  %s1175_s22 = smov 0  }
   0x7   :  { %s1177_s23 = smov 0   ;;  %s1179_s24 = smov 0  }
   0x8   :  { %s1181_s25 = smov 0  }
   0x9 LB: > { %s773_s26 = sadd.s32 4294967295, %s1122_s25   ;;  %s774_s27 = sadd.s32 4294967294, %s1122_s25   ;;  %s1122_s25 = sphi %s1181_s25, %s20_s25   ;;  %s1118_s24 = sphi %s1179_s24, %s1455_s24   ;;  %s1114_s23 = sphi %s1177_s23, %s1454_s23   ;;  %s1110_s22 = sphi %s1175_s22, %s1453_s22   ;;  %s1106_s21 = sphi %s1173_s21, %s1452_s21   ;;  %s1102_s20 = sphi %s1171_s20, %s1451_s20   ;;  %s1098_s19 = sphi %s1169_s19, %s1450_s19   ;;  %s1094_s18 = sphi %s1167_s18, %s1449_s18   ;;  %s1090_s17 = sphi %s1165_s17, %s1448_s17   ;;  %s1086_s16 = sphi %s1163_s16, %s1447_s16   ;;  %s1082_s15 = sphi %s1161_s15, %s1446_s15  }
   0xa   : > { %s35_s28 = sadd.s32 1, %s1114_s23  ;;  %s39_s29 = sadd.s32 1, %s1118_s24 }
   0xb   : > { %p37_p0 = scmp.ge.s32.totalorder %s35_s28, 2  ;;  %s106_s30 = sadd.s32 1, %s1102_s20 }
   0xc   : > { %p113_p1 = scmp.ne.s32.totalorder %s1102_s20, %s1098_s19  ;;  %p114_p2 = scmp.eq.s32.totalorder %s1122_s25, 0 }
   0xd   : > { %s1457_s28 = smov (%p37_p0, %s35_s28), 0  ;;  %s1459_s29 = smov (!%p37_p0, %s39_s29), %s1118_s24 }
   0xe   : > { %1434 = sst [smem:[#allocation8_spill]] %s1457_s28  ;;  %s103_s5 = ssub.s32 %s1114_s23, %s1457_s28 }
   0xf   : > { %p1227_p3 = por %p114_p2, %p113_p1  ;;  %p41_p4 = scmp.ge.s32.totalorder %s1459_s29, 2 }
  0x10   : > { %p104_p5 = scmp.eq.s32.totalorder %s103_s5, 0  ;;  %p119_p6 = scmp.ne.s32.totalorder %s1098_s19, %s1094_s18 }
  0x11   : > { %p120_p7 = scmp.eq.s32.totalorder %s773_s26, 0  ;;  %s1461_s29 = smov (%p41_p4, %s1459_s29), 0 }
  0x12   : > { %1436 = sst [smem:[#allocation9_spill]] %s1461_s29  ;;  %s155_s9 = ssub.s32 %s1118_s24, %s1461_s29 }
  0x13   : > { %s1235_s7 = scalar_select %p104_p5, %s1102_s20, %s106_s30  }
  0x14   : > { %p1237_p8 = por %p120_p7, %p119_p6  ;;  %s157_s10 = sor.u32 %s155_s9, %s103_s5 }
  0x15   : > { %s162_s11 = sadd.s32 1, %s1090_s17  ;;  %p160_p9 = scmp.eq.s32.totalorder %s157_s10, 0 }
  0x16   : > { %p172_p10 = scmp.ne.s32.totalorder %s1090_s17, %s1086_s16  ;;  %p173_p11 = scmp.eq.s32.totalorder %s773_s26, 3 }
  0x17   : > { %p178_p12 = scmp.ne.s32.totalorder %s1086_s16, %s1082_s15  ;;  %p179_p0 = scmp.eq.s32.totalorder %s774_s27, 3 }
  0x18   : > { %s1249_s12 = scalar_select %p160_p9, %s1090_s17, %s162_s11  }
  0x19   : > { %p1251_p13 = por %p173_p11, %p172_p10  ;;  %p843_p1 = scmp.lt.s32.totalorder %s1122_s25, 4 }
  0x1a   : > { %p1256_p2 = por %p179_p0, %p178_p12  ;;  %s227_s18 = sand.u32 1, %s1102_s20  }
  0x1b   : > { %s1438_s13 = scalar_select %p1251_p13, 1, 0 }
  0x1c   : > { %s1439_s14 = scalar_select %p1256_p2, 1, 0 }
  0x1d   : > { %s777_s30 = sshll.u32 %s227_s18, 6  ;;  %s801_s5 = sshll.u32 %s1114_s23, 10 }
  0x1e   : > { %s1265_s26 = scalar_lea.hbm %s1428_s2, %s801_s5  ;;  %s231_s11 = scalar_lea.vmem [#allocation2], %s777_s30 }
  0x1f   : > { %s238_s29 = sshll.u32 %s231_s11, 4  ;;  %p1271_p4 = pnand %p843_p1, %p1227_p3  ;;  %s1267_s29 = int_to_ptr.vmem [resolvable:$true] %s238_s29 }
  0x20   : > { %s1276_s28 = scalar_lea.sflag [#allocation3], %s227_s18  ;;  %s970_s5 = scalar_lea.hbm %s1265_s26, 1024 }
  0x21   : > { %p971_p6 = scmp.ne.s32.totalorder %s1265_s26, %s970_s5  ;;  %p972_p7 = pneg %p1271_p4 }
  0x22   : > { %s975_s6 = scalar_lea.hbm %s1428_s2, 2048  ;;  %p976_p3 = scmp.lt.u32.totalorder %s1265_s26, %s1428_s2 }
  0x23   : > { %p973_p9 = pnand %p972_p7, %p971_p6  ;;  %p977_p11 = scmp.lt.u32.totalorder %s975_s6, %s970_s5 }
  0x24   : > { %p979_p0 = scmp.lt.u32.totalorder %s970_s5, %s1265_s26 }
  0x25   : > { %p974_p10 = pneg %p973_p9  ;;  %p978_p12 = por %p977_p11, %p976_p3 }
  0x27   : > { %p980_p1 = por %p979_p0, %p978_p12 }
  0x29   : > { %p981_p5 = pnand %p980_p1, %p974_p10 }
  0x2b   : > { %984 = shalt.err (!%p981_p5)
}
  0x2c   : > { %s985_s18 = scalar_lea.vmem %s1267_s29, 1024  ;;  %s1124_s30 = smov [#allocation2]  }
  0x2d   : > { %p986_p6 = scmp.ne.s32.totalorder %s1267_s29, %s985_s18  ;;  %s990_s9 = sshll.u32 %s1124_s30, 4  ;;  %s991_s9 = int_to_ptr.vmem [resolvable:$false] %s990_s9 }
  0x2e   : > { %s992_s10 = scalar_lea.vmem %s991_s9, 2048  ;;  %p993_p13 = scmp.lt.s32.totalorder %s1267_s29, %s991_s9 }
  0x2f   : > { %p988_p9 = pnand %p986_p6, %p972_p7  ;;  %p994_p3 = scmp.lt.s32.totalorder %s992_s10, %s985_s18 }
  0x31   : > { %p989_p2 = pneg %p988_p9  ;;  %p995_p11 = por %p994_p3, %p993_p13 }
  0x33   : > { %p996_p12 = pnand %p995_p11, %p989_p2 }
  0x35   : > { %999 = shalt.err (!%p996_p12)
}
  0x36   : > { %s1125_s5 = smov 64   ;;  %s1126_s6 = smov 4  }
  0x37   : > { %838 = dma.hbm_to_vmem [thread:$0]  (!%p1271_p4), %s1265_s26, 1024, %s1267_s29, %s1276_s28, %s1125_s5, %s1125_s5, %s1126_s6  }
  0x38   : > { %p253_p5 = scmp.lt.s32.totalorder %s1122_s25, 5  ;;  %p1441_p7 = scmp.ge.s32.totalorder %s1122_s25, 1 }
  0x3a   : > { %p254_p10 = pnand %p1441_p7, %p253_p5 }
  0x3b   : > { %s259_s11 = sand.u32 (!%p254_p10), 1, %s1098_s19  }
  0x3c   : > { %257 = sbr.rel (%p254_p10) target bundleno = 481 (0x1e1), region = 36  ;;  %s781_s18 = sshll.u32 (!%p254_p10), %s259_s11, 6 }
  0x3d   : > { %s260_s30 = scalar_lea.sflag (!%p254_p10), [#allocation3], %s259_s11  ;;  %s1308_s9 = scalar_lea.vmem (!%p254_p10), [#allocation2], %s781_s18 }
  0x43   : > { %1073 = dma.done.wait (%p1237_p8), %s260_s30, 1024  }
  0x44   : > { %1075 = vsyncadd (%p1237_p8), %s260_s30, 4294966272  ;;  %p314_p13 = scmp.lt.s32.totalorder %s1110_s22, 1  ;;  %p316_p2 = scmp.lt.s32.totalorder %s1106_s21, 1  ;;  %v1127_v0 = vmov 0   ;;  %v1128_v1 = vmov 1   ;;  %v952_v4 = vld [vmem:[%s1308_s9] sm:$0xff]   ;;  %v478_v53 = vlaneseq }
  0x45   : > { %943 = vset.pattern.permute.xlu1 %v1127_v0  ;;  %944 = vset.pattern.permute.xlu0 %v1128_v1  ;;  %v1129_v5 = vmov 0.0   ;;  %s1130_s11 = smov 126   ;;  %v953_v6 = vld [vmem:[%s1308_s9 + $0x8] sm:$0xff]   ;;  %vm1131_vm0 = vmmov 0   ;;  %v954_v7 = vld [vmem:[%s1308_s9 + $0x10] sm:$0xff]   ;;  %v955_v11 = vld [vmem:[%s1308_s9 + $0x18] sm:$0xff]  }
  0x46   : > { %s315_s28 = scalar_select %p314_p13, %s1110_s22, 1  ;;  %811 = vmatprep.subr.bf16.mxu0 %v1129_v5  ;;  %827 = vmatprep.mubr.msk.bf16.mxu0 %vm1131_vm0, %v1129_v5  ;;  %v956_v13 = vld [vmem:[%s1308_s9 + $0x20] sm:$0xff]   ;;  %v957_v14 = vld [vmem:[%s1308_s9 + $0x28] sm:$0xff]   ;;  %v958_v15 = vld [vmem:[%s1308_s9 + $0x30] sm:$0xff]   ;;  %v1133_v42 = vmov 3   ;;  %v1134_v45 = vmov 2  }
  0x47   : > { %s1319_s29 = scalar_select %p316_p2, %s1106_s21, 1  ;;  %812 = vmatpush3.bf16.msra.mxu0 %v952_v4  ;;  %v959_v18 = vld [vmem:[%s1308_s9 + $0x38] sm:$0xff]   ;;  %v479_v56 = vshrl.u32 %v478_v53, 7 }
  0x48   : > { %s783_s26 = sshll.u32 %s315_s28, 1  ;;  %813 = vmatprep.subr.bf16.mxu0 %v1129_v5  ;;  %s1132_s9 = smov 127  }
  0x49   : > { %s322_s27 = sadd.s32 %s783_s26, %s1319_s29  ;;  %s787_s26 = sshll.u32 %s1319_s29, 2  ;;  %v490_v58 = vsub.s32 1, %v479_v56  ;;  %v480_v60 = vsub.s32 0, %v479_v56 }
  0x4a   : > { %s784_s8 = sshll.u32 %s322_s27, 3  ;;  %s339_s10 = scalar_lea.vmem %s1429_s3, %s787_s26 }
  0x4b   : > { %s335_s6 = scalar_lea.vmem %s1427_s1, %s784_s8  ;;  %s324_s28 = scalar_lea.vmem %s1426_s0, %s784_s8  ;;  %814 = vmatpush3.bf16.msra.mxu0 %v953_v6  ;;  %v472_v50 = vld [vmem:[%s339_s10] sm:$0xf] }
  0x4c   : > { %v1326_v2 = vld [vmem:[%s335_s6] sm:$0xff]  ;;  %815 = vmatprep.subr.bf16.mxu0 %v1129_v5  ;;  %v524_v52 = vmul.f32 0.5, %v472_v50  ;;  %s311_s29 = sand.u32 1, %s1086_s16   ;;  %s797_s6 = sshll.u32 %s1110_s22, 1 }
  0x4d   : > { %v517_v3 = vmul.f32 0.5, %v1326_v2  ;;  %v341_v8 = vld [vmem:[%s324_s28] sm:$0xff]  ;;  %s782_s5 = sshll.u32 %s311_s29, 3  ;;  %p1442_p4 = scmp.ne.s32.totalorder %s1438_s13, 0 }
  0x4e   : > { %v342_v9 = vand.u32 2147483647, %v341_v8  ;;  %v361_v19 = vsub.f32 0.0, %v341_v8  ;;  %vm350_vm1 = vcmp.ge.f32.partialorder %v341_v8, 0.0  ;;  %v355_v23 = vmax.f32 %v341_v8, 0.0  ;;  %s313_s30 = scalar_lea.vmem [#allocation5], %s782_s5 }
  0x4f   : > { %519 = vrot.lane.b32.xlu0 %v517_v3, %s1130_s11  ;;  %816 = vmatpush3.bf16.msra.mxu0 %v954_v7  ;;  %v526_v54 = vrot.slane %v524_v52, 2  ;;  %s628_s11 = sadd.s32 %s1106_s21, %s797_s6  ;;  %s632_s28 = sshll.u32 %s313_s30, 4  ;;  %s1366_s28 = int_to_ptr.vmem [resolvable:$true] %s632_s28 }
  0x50   : > { %v343_v10 = vsub.f32 0.0, %v342_v9  ;;  %817 = vmatprep.subr.bf16.mxu0 %v1129_v5  ;;  %v362_v25 = vmax.f32 %v361_v19, 0.0  ;;  %s798_s18 = sshll.u32 %s628_s11, 7  ;;  %s616_s21 = scalar_lea.sflag [#allocation4], %s311_s29 }
  0x51   : > { %v528_v57 = vsub.f32 %v472_v50, %v526_v54  ;;  %v529_v59 = vadd.f32 %v526_v54, %v472_v50  ;;  %s1364_s22 = scalar_lea.hbm %s1430_s4, %s798_s18  ;;  %s1000_s27 = scalar_lea.vmem %s1366_s28, 128 }
  0x52   : > { %v344_v12 = vmul.f32 1.442695, %v343_v10  ;;  %p1001_p8 = scmp.ne.s32.totalorder %s1366_s28, %s1000_s27  ;;  %s1135_s8 = smov [#allocation5]  }
  0x53   : > { %818 = vmatpush3.bf16.msra.mxu0 %v955_v11  ;;  %v579_v61 = vrot.slane %v528_v57, %v490_v58  ;;  %v536_v63 = vsub.f32 %v529_v59, %v528_v57  ;;  %v549_v3 = vrot.slane %v529_v59, %v480_v60  ;;  %s1004_s10 = sshll.u32 %s1135_s8, 4  ;;  %s1005_s10 = int_to_ptr.vmem [resolvable:$false] %s1004_s10 }
  0x54   : > { %960 = vpow2.f32 %v344_v12  ;;  %819 = vmatprep.subr.bf16.mxu0 %v1129_v5  ;;  %p1002_p0 = pnand %p1001_p8, %p1442_p4  ;;  %s1006_s5 = scalar_lea.vmem %s1005_s10, 256 }
  0x55   : > { %v538_v6 = vrot.slane %v536_v63, 1  ;;  %p1007_p6 = scmp.lt.s32.totalorder %s1366_s28, %s1005_s10  ;;  %p1008_p9 = scmp.lt.s32.totalorder %s1006_s5, %s1000_s27 }
  0x56   : > { %p1003_p1 = pneg %p1002_p0 }
  0x57   : > { %820 = vmatpush3.bf16.msra.mxu0 %v956_v13  ;;  %p1009_p3 = por %p1008_p9, %p1007_p6 }
  0x58   : > { %821 = vmatprep.subr.bf16.mxu0 %v1129_v5 }
  0x59   : > { %p1010_p11 = pnand %p1009_p3, %p1003_p1 }
  0x5b   : > { %822 = vmatpush3.bf16.msra.mxu0 %v957_v14 }
  0x5c   : > { %823 = vmatprep.subr.bf16.mxu0 %v1129_v5 }
  0x5e   : > { %v961_v16 = vpop.eup %960 }
  0x5f   : > { %v346_v17 = vadd.f32 1.0, %v961_v16  ;;  %824 = vmatpush3.bf16.msra.mxu0 %v958_v15  ;;  %v540_v15 = vmul.f32 %v538_v6, %v536_v63 }
  0x60   : > { %825 = vmatprep.subr.bf16.mxu0 %v1129_v5 }
  0x61   : > { %962 = vlog2.f32 %v346_v17 }
  0x62   : > { %964 = vrcp.f32 %v346_v17 }
  0x63   : > { %826 = vmatpush3.bf16.msra.mxu0 %v959_v18 }
  0x6b   : > { %v963_v20 = vpop.eup %962 }
  0x6c   : > { %v965_v21 = vpop.eup %964  ;;  %v348_v22 = vmul.f32 0.6931472, %v963_v20  ;;  %v592_v20 = vrot.slane %v540_v15, %v480_v60 }
  0x6d   : > { %v351_v24 = vmul.f32 %v965_v21, %v961_v16 }
  0x6e   : > { %v356_v28 = vadd.f32 %v355_v23, %v348_v22  ;;  %v363_v32 = vadd.f32 %v362_v25, %v348_v22 }
  0x6f   : > { %v352_v26 = vsel %vm350_vm1, %v965_v21, %v351_v24 }
  0x70   : > { %v353_v27 = vmul.f32 %v352_v26, %v352_v26  ;;  %v358_v29 = vsub.f32 1.0, %v352_v26 }
  0x72   : > { %v354_v30 = vmul.f32 0.75, %v353_v27  ;;  %v359_v31 = vmul.f32 %v358_v29, %v358_v29  ;;  %v481_v27 = vrot.slane %v472_v50, %v480_v60  ;;  %v491_v29 = vrot.slane %v472_v50, %v490_v58 }
  0x74   : > { %v357_v33 = vmul.f32 %v356_v28, %v354_v30  ;;  %v360_v34 = vmul.f32 0.25, %v359_v31  ;;  %v512_v28 = vsub.s32 3, %v479_v56 }
  0x76   : > { %v364_v35 = vmul.f32 %v363_v32, %v360_v34  ;;  %v501_v32 = vsub.s32 2, %v479_v56 }
  0x78   : > { %v365_v36 = vsub.f32 %v364_v35, %v357_v33  ;;  %v513_v35 = vrot.slane %v472_v50, %v512_v28 }
  0x7a   : > { %v366_v37 = vpack.c.bf16 %v365_v36, %v365_v36 }
  0x7c   : > { %828 = vmatmul.mubr.bf16.vlgmr.msra.gmra.mrb[0].mxu0 %v366_v37 }
  0xc1   : > { %v520_v38 = vpop.permute.xlu0 %519 }
  0xc2   : > { %v522_v39 = vsub.f32 %v1326_v2, %v520_v38  ;;  %v523_v40 = vadd.f32 %v520_v38, %v1326_v2  ;;  %v502_v38 = vrot.slane %v472_v50, %v501_v32 }
  0xc4   : > { %543 = vperm.xlu1 %943, %v523_v40   ;;  %v530_v41 = vsub.f32 %v523_v40, %v522_v39 }
  0xc6   : > { %532 = vrot.lane.b32.xlu0 %v530_v41, %s1132_s9 }
  0xc8   : > { %553 = vperm.xlu1 %943, %v522_v39  }
  0xca   : > { %564 = vperm.xlu0 %944, %v523_v40  }
  0xcc   : > { %945 = vset.pattern.permute.xlu1 %v1128_v1 }
  0xcd   : > { %573 = vperm.xlu1 %945, %v522_v39  }
  0xce   : > { %947 = vset.pattern.permute.xlu0 %v1127_v0 }
  0xcf   : > { %475 = vperm.xlu0 %947, %v1326_v2  }
  0xd1   : > { %946 = vset.pattern.permute.xlu1 %v1127_v0 }
  0xd3   : > { %950 = vset.pattern.permute.xlu0 %v1133_v42 }
  0xd4   : > { %507 = vperm.xlu0 %950, %v1326_v2  }
  0xd8   : > { %951 = vset.pattern.permute.xlu0 %v1127_v0  ;;  %v559_v0 = vrot.slane %v528_v57, %v480_v60 }
 0x138   : > { %v533_v43 = vpop.permute.xlu0 %532 }
 0x139   : > { %v535_v44 = vmul.f32 %v533_v43, %v530_v41 }
 0x13b   : > { %586 = vperm.xlu1 %946, %v535_v44  }
 0x13f   : > { %948 = vset.pattern.permute.xlu1 %v1128_v1  ;;  %v570_v1 = vrot.slane %v529_v59, %v490_v58 }
 0x140   : > { %485 = vperm.xlu1 %948, %v1326_v2  }
 0x143   : > { %v544_v51 = vpop.permute.xlu1 %543 }
 0x144   : > { %949 = vset.pattern.permute.xlu1 %v1134_v45  ;;  %v597_v11 = vmax.f32 %v544_v51, %v549_v3  ;;  %v550_v13 = vmin.f32 %v544_v51, %v549_v3 }
 0x145   : > { %496 = vperm.xlu1 %949, %v1326_v2  }
 0x147   : > { %v554_v55 = vpop.permute.xlu1 %553 }
 0x148   : > { %v598_v7 = vmin.f32 %v554_v55, %v559_v0  ;;  %v560_v9 = vmax.f32 %v554_v55, %v559_v0 }
 0x149   : > { %v565_v2 = vpop.permute.xlu0 %564 }
 0x14a   : > { %v601_v8 = vmax.f32 %v565_v2, %v570_v1  ;;  %v571_v10 = vmin.f32 %v565_v2, %v570_v1  ;;  %v599_v16 = vsub.f32 %v597_v11, %v598_v7  ;;  %v561_v17 = vsub.f32 %v550_v13, %v560_v9 }
 0x14c   : > { %v574_v62 = vpop.permute.xlu1 %573  ;;  %v600_v21 = vmax.f32 %v599_v16, 0.0  ;;  %v562_v22 = vmax.f32 %v561_v17, 0.0 }
 0x14d   : > { %v602_v4 = vmin.f32 %v574_v62, %v579_v61  ;;  %v580_v5 = vmax.f32 %v574_v62, %v579_v61 }
 0x14e   : > { %v476_v30 = vpop.permute.xlu0 %475 }
 0x14f   : > { %v1351_v46 = vpop.f32.mrb[0].mxu0  ;;  %v603_v12 = vsub.f32 %v601_v8, %v602_v4  ;;  %v581_v14 = vsub.f32 %v571_v10, %v580_v5  ;;  %v482_v34 = vsub.f32 %v476_v30, %v481_v27 }
 0x150   : > { %v829_v47 = vpop.f32.mrb[1].mxu0 }
 0x151   : > { %v468_v48 = vpop.f32.mrb[2].mxu0  ;;  %v604_v18 = vmax.f32 %v603_v12, 0.0  ;;  %v582_v19 = vmax.f32 %v581_v14, 0.0  ;;  %v483_v40 = vand.u32 2147483647, %v482_v34 }
 0x152   : > { %v830_v49 = vpop.f32.mrb[3].mxu0 }
 0x153   : > { %v605_v23 = vmul.f32 %v604_v18, %v600_v21  ;;  %v583_v25 = vmul.f32 %v582_v19, %v562_v22  ;;  %v508_v37 = vpop.permute.xlu0 %507 }
 0x154   : > { %v514_v41 = vsub.f32 %v508_v37, %v513_v35 }
 0x155   : > { %966 = vrcp.f32 %v605_v23 }
 0x156   : > { %v515_v48 = vand.u32 2147483647, %v514_v41 }
 0x15f   : > { %v967_v49 = vpop.eup %966 }
 0x1ba   : > { %v587_v24 = vpop.permute.xlu1 %586 }
 0x1bb   : > { %v593_v26 = vadd.f32 %v592_v20, %v587_v24 }
 0x1bd   : > { %v594_v31 = vsub.f32 %v593_v26, %v583_v25 }
 0x1bf   : > { %968 = vrcp.f32 %v594_v31  ;;  %v486_v33 = vpop.permute.xlu1 %485  ;;  %v606_v44 = vsub.f32 %v605_v23, %v594_v31 }
 0x1c0   : > { %v492_v36 = vsub.f32 %v486_v33, %v491_v29 }
 0x1c1   : > { %v608_v54 = vmul.f32 %v967_v49, %v606_v44 }
 0x1c2   : > { %v493_v39 = vand.u32 2147483647, %v492_v36 }
 0x1c4   : > { %v497_v42 = vpop.permute.xlu1 %496  ;;  %v494_v45 = vadd.f32 %v493_v39, %v483_v40 }
 0x1c5   : > { %v503_v43 = vsub.f32 %v497_v42, %v502_v38 }
 0x1c7   : > { %v504_v47 = vand.u32 2147483647, %v503_v43 }
 0x1c9   : > { %v969_v51 = vpop.eup %968  ;;  %v505_v52 = vadd.f32 %v504_v47, %v494_v45 }
 0x1ca   : > { %v596_v53 = vmul.f32 %v969_v51, %v583_v25 }
 0x1cb   : > { %v516_v55 = vadd.f32 %v515_v48, %v505_v52 }
 0x1cc   : > { %v609_v50 = vsub.f32 %v596_v53, %v608_v54 }
 0x1cd   : > { %v610_v56 = vmul.f32 2.0, %v516_v55 }
 0x1ce   : > { %v612_v57 = vmul.f32 5.0, %v609_v50 }
 0x1cf   : > { %v611_v58 = vadd.f32 %v610_v56, %v1351_v46 }
 0x1d1   : > { %v613_v59 = vsub.f32 %v611_v58, %v612_v57 }
 0x1d3   : > { %614 = vst [vmem:[%s313_s30] sm:$0xff] %v613_v59 }
 0x1d4   : > { %1013 = shalt.err (!%p1010_p11)
}
 0x1d5   : > { %s1014_s29 = scalar_lea.hbm %s1364_s22, 128  ;;  %s1018_s18 = scalar_lea.hbm %s1430_s4, 512 }
 0x1d6   : > { %p1015_p12 = scmp.ne.s32.totalorder %s1364_s22, %s1014_s29  ;;  %p1019_p10 = scmp.lt.u32.totalorder %s1364_s22, %s1430_s4 }
 0x1d7   : > { %p1020_p13 = scmp.lt.u32.totalorder %s1018_s18, %s1014_s29  ;;  %p1022_p8 = scmp.lt.u32.totalorder %s1014_s29, %s1364_s22 }
 0x1d8   : > { %p1016_p5 = pnand %p1015_p12, %p1442_p4 }
 0x1d9   : > { %p1021_p2 = por %p1020_p13, %p1019_p10 }
 0x1da   : > { %p1017_p7 = pneg %p1016_p5 }
 0x1db   : > { %p1023_p0 = por %p1022_p8, %p1021_p2 }
 0x1dd   : > { %p1024_p1 = pnand %p1023_p0, %p1017_p7 }
 0x1df   : > { %1027 = shalt.err (!%p1024_p1)
}
 0x1e0   : > { %833 = dma.vmem_to_hbm [thread:$0]  (%p1442_p4), %s1366_s28, 128, %s1364_s22, %s616_s21  }
 0x1e1 PF: > { %p844_p6 = scmp.ge.s32.totalorder %s1122_s25, 2  ;;  %s644_s26 = sand.u32 1, %s1082_s15  }
 0x1e2   : > { %p1443_p9 = scmp.ne.s32.totalorder %s1439_s14, 0  ;;  %s645_s27 = scalar_lea.sflag [#allocation4], %s644_s26 }
 0x1e4   : > { %p840_p3 = pnand %p844_p6, %p1443_p9 }
 0x1e6   : > { %1077 = dma.done.wait (!%p840_p3), %s645_s27, 128  }
 0x1e7   : > { %1079 = vsyncadd (!%p840_p3), %s645_s27, 4294967168  ;;  %s20_s25 = sadd.s32 1, %s1122_s25   ;;  %s1444_s13 = sld [smem:[#allocation8_spill]] }
 0x1e8   : > { %p17_p11 = scmp.ge.s32.totalorder %s20_s25, 6   ;;  %s1445_s28 = sld [smem:[#allocation9_spill]] }
 0x1e9   : > { %s1446_s15 = smov %s1086_s16  ;;  %s1447_s16 = smov %s1090_s17 }
 0x1ea   : > { %s1448_s17 = smov %s1249_s12  ;;  %s1449_s18 = smov %s1098_s19 }
 0x1eb   : > { %s1450_s19 = smov %s1102_s20  ;;  %s1451_s20 = smov %s1235_s7 }
 0x1ec   : > { %s1452_s21 = smov %s1114_s23  ;;  %s1453_s22 = smov %s1118_s24 }
 0x1ed   : > { %s1454_s23 = smov %s1444_s13  ;;  %19 = sbr.rel (!%p17_p11) target bundleno = 9 (0x9), region = 90 }
 0x1ee   : > { %s1455_s24 = smov %s1445_s28 }
 0x1f4   :  { %650 = vsyncpa [#allocation3], 1 }
 0x1f5   :  { %652 = vsyncpa [#allocation3 + $0x1], 1 }
 0x1f6   :  { %653 = vsyncpa [#allocation4], 1 }
 0x1f7   :  { %655 = vsyncpa [#allocation4 + $0x1], 1 }

</bundles_post_ra>
